<compile_context>
chip_gen: v7x
topology: tpu7x:2x2x1
jax: 0.10.0
libtpu: 0.0.40
codegen_flags: <defaults>
</compile_context>

<pallas_src>
import jax
import jax.numpy as jnp
from jax.experimental import pallas as pl
from jax.experimental.pallas import tpu as pltpu


def make_decoder_kernel(num_layers, hidden_size):
    H = hidden_size

    def kernel(*refs):
        it = iter(refs)
        # ---- inputs -------------------------------------------------------
        img_ref = next(it)          # (BB, img_channels)
        c_ref = next(it)            # (BB, emb_size)
        h0_ref = next(it)           # (L, BB, H)
        wih0_img = next(it)         # (img_channels, 3H)
        wih0_c = next(it)           # (emb_size, 3H)
        whh0 = next(it)             # (H, 3H)
        bih0 = next(it)             # (1, 3H)
        bhh0 = next(it)             # (1, 3H)
        upper = [(next(it), next(it), next(it), next(it))
                 for _ in range(num_layers - 1)]
        fc1_w = next(it)            # (H, P)
        fc1_b = next(it)            # (1, P)
        pos_w = next(it)            # (P, pos_emb_size)
        fc2_wz = next(it)           # (H, V)
        fc2_wp = next(it)           # (pos_emb_size, V)
        fc2_b = next(it)            # (1, V)
        # ---- outputs ------------------------------------------------------
        logits_ref = next(it)       # (BB, V)
        last_h_ref = next(it)       # (L, BB, H)
        pos_logits_ref = next(it)   # (BB, P)

        def gru_cell(gi, h_prev, whh_ref, bhh_ref):
            gh = jnp.dot(h_prev, whh_ref[...],
                         preferred_element_type=jnp.float32) + bhh_ref[...]
            r = jax.nn.sigmoid(gi[:, 0:H] + gh[:, 0:H])
            u = jax.nn.sigmoid(gi[:, H:2 * H] + gh[:, H:2 * H])
            n = jnp.tanh(gi[:, 2 * H:3 * H] + r * gh[:, 2 * H:3 * H])
            return (1.0 - u) * n + u * h_prev

        # Layer 0: input = cat(img_emb, c_emb) -> split-weight matmuls (no concat).
        gi0 = (jnp.dot(img_ref[...], wih0_img[...],
                       preferred_element_type=jnp.float32)
               + jnp.dot(c_ref[...], wih0_c[...],
                         preferred_element_type=jnp.float32)
               + bih0[...])
        h_new = gru_cell(gi0, h0_ref[0], whh0, bhh0)
        last_h_ref[0] = h_new.astype(last_h_ref.dtype)

        x = h_new
        for l, (wih, whh, bih, bhh) in enumerate(upper, start=1):
            gi = jnp.dot(x, wih[...],
                         preferred_element_type=jnp.float32) + bih[...]
            h_new = gru_cell(gi, h0_ref[l], whh, bhh)
            last_h_ref[l] = h_new.astype(last_h_ref.dtype)
            x = h_new

        # TODO(synk): nn.Dropout / GRU inter-layer dropout are identity in eval
        # mode; training-mode dropout masks are not implemented here.
        z = x

        # fc1 -> positional logits
        pos_logits = jnp.dot(z, fc1_w[...],
                             preferred_element_type=jnp.float32) + fc1_b[...]
        pos_logits_ref[...] = pos_logits.astype(pos_logits_ref.dtype)

        # Soft positional embedding: softmax over the pos-vocab (lane) axis,
        # denominator via EUP approx reciprocal.
        m = jnp.max(pos_logits, axis=-1, keepdims=True)
        e = jnp.exp(pos_logits - m)
        inv = pl.reciprocal(jnp.sum(e, axis=-1, keepdims=True), approx=True)
        probs = e * inv
        pos_emb = jnp.dot(probs, pos_w[...],
                          preferred_element_type=jnp.float32)

        # fc2 on cat(z, pos_emb) via split weights (no in-kernel concat).
        logits = (jnp.dot(z, fc2_wz[...], preferred_element_type=jnp.float32)
                  + jnp.dot(pos_emb, fc2_wp[...],
                            preferred_element_type=jnp.float32)
                  + fc2_b[...])
        logits_ref[...] = logits.astype(logits_ref.dtype)

    return kernel


def decoder_forward(hidden, img_emb, c_emb, params, *, block_b=128):
    """Pallas equivalent of Decoder.forward(hidden, img_emb, c_emb, gt_pos=None).

    hidden  : (L, B, H)      img_emb : (B, img_channels)     c_emb : (B, emb_size)
    returns : logits (B, V), last_hidden (L, B, H), pos_logits (B, P)
    """
    L, B, H = hidden.shape
    img_ch = img_emb.shape[1]
    emb = c_emb.shape[1]
    P = params["fc1_w"].shape[1]
    e_pos = params["pos_emb_w"].shape[1]
    V = params["fc2_w"].shape[1]

    BB = min(B, block_b)
    grid = (pl.cdiv(B, BB),)

    def full(shape):
        return pl.BlockSpec(shape, lambda b: (0,) * len(shape))

    wih0, whh0, bih0, bhh0 = params["gru"][0]
    args = [img_emb, c_emb, hidden,
            wih0[:img_ch], wih0[img_ch:], whh0,
            bih0.reshape(1, -1), bhh0.reshape(1, -1)]
    in_specs = [
        pl.BlockSpec((BB, img_ch), lambda b: (b, 0)),
        pl.BlockSpec((BB, emb), lambda b: (b, 0)),
        pl.BlockSpec((L, BB, H), lambda b: (0, b, 0)),
        full((img_ch, 3 * H)), full((emb, 3 * H)), full((H, 3 * H)),
        full((1, 3 * H)), full((1, 3 * H)),
    ]
    for (wih, whh, bih, bhh) in params["gru"][1:]:
        args += [wih, whh, bih.reshape(1, -1), bhh.reshape(1, -1)]
        in_specs += [full((H, 3 * H)), full((H, 3 * H)),
                     full((1, 3 * H)), full((1, 3 * H))]
    args += [params["fc1_w"], params["fc1_b"].reshape(1, -1),
             params["pos_emb_w"],
             params["fc2_w"][:H], params["fc2_w"][H:],
             params["fc2_b"].reshape(1, -1)]
    in_specs += [full((H, P)), full((1, P)), full((P, e_pos)),
                 full((H, V)), full((e_pos, V)), full((1, V))]

    out_specs = [
        pl.BlockSpec((BB, V), lambda b: (b, 0)),
        pl.BlockSpec((L, BB, H), lambda b: (0, b, 0)),
        pl.BlockSpec((BB, P), lambda b: (b, 0)),
    ]
    out_shape = (jax.ShapeDtypeStruct((B, V), jnp.float32),
                 jax.ShapeDtypeStruct((L, B, H), jnp.float32),
                 jax.ShapeDtypeStruct((B, P), jnp.float32))

    logits, last_hidden, pos_logits = pl.pallas_call(
        make_decoder_kernel(L, H),
        grid_spec=pltpu.PrefetchScalarGridSpec(
            num_scalar_prefetch=0,
            grid=grid,
            in_specs=in_specs,
            out_specs=out_specs,
        ),
        out_shape=out_shape,
        compiler_params=pltpu.CompilerParams(
            dimension_semantics=("parallel",)),
    )(*args)
    return logits, last_hidden, pos_logits


def reference_forward(hidden, img_emb, c_emb, params):
    """Pure-JAX reference of Decoder.forward (eval mode, gt_pos=None path)."""
    L, B, H = hidden.shape
    inp = jnp.concatenate([img_emb, c_emb], axis=1)
    new_h = []
    for l, (wih, whh, bih, bhh) in enumerate(params["gru"]):
        h_prev = hidden[l]
        gi = inp @ wih + bih
        gh = h_prev @ whh + bhh
        r = jax.nn.sigmoid(gi[:, :H] + gh[:, :H])
        u = jax.nn.sigmoid(gi[:, H:2 * H] + gh[:, H:2 * H])
        n = jnp.tanh(gi[:, 2 * H:] + r * gh[:, 2 * H:])
        h_new = (1.0 - u) * n + u * h_prev
        new_h.append(h_new)
        inp = h_new
    z = inp  # dropout identity in eval mode
    pos_logits = z @ params["fc1_w"] + params["fc1_b"]
    probs = jax.nn.softmax(pos_logits, axis=1)
    pos_emb = probs @ params["pos_emb_w"]
    logits = (jnp.concatenate([z, pos_emb], axis=1) @ params["fc2_w"]
              + params["fc2_b"])
    return logits, jnp.stack(new_h, axis=0), pos_logits


if __name__ == "__main__":
    # Small shapes consistent with the module's opt fields.
    B = 2
    img_channels = 4          # opt.image_channels
    emb_size = 32             # opt.word_embedding_size
    pos_emb_size = 16         # opt.pos_emb_size
    rnn_size = 32             # opt.rnn_size
    rnn_layers = 2            # opt.rnn_layers
    pos_vocab_size = 15       # opt.pos_vocab_size  -> P = 16
    c_vocab_size = 63         # opt.c_vocab_size    -> V = 64
    P = pos_vocab_size + 1
    V = c_vocab_size + 1

    key = jax.random.PRNGKey(0)
    keys = iter(jax.random.split(key, 32))
    nk = lambda: next(keys)

    img_emb = jax.random.normal(nk(), (B, img_channels), jnp.float32)
    c_emb = jax.random.normal(nk(), (B, emb_size), jnp.float32)
    hidden = jax.random.normal(nk(), (rnn_layers, B, rnn_size), jnp.float32)

    gru = []
    for l in range(rnn_layers):
        n_in = (emb_size + img_channels) if l == 0 else rnn_size
        gru.append((
            jax.random.normal(nk(), (n_in, 3 * rnn_size), jnp.float32) * 0.1,
            jax.random.normal(nk(), (rnn_size, 3 * rnn_size), jnp.float32) * 0.1,
            jax.random.normal(nk(), (3 * rnn_size,), jnp.float32) * 0.1,
            jax.random.normal(nk(), (3 * rnn_size,), jnp.float32) * 0.1,
        ))
    fc1_w = jax.random.normal(nk(), (rnn_size, P), jnp.float32) * 0.1
    fc1_b = jax.random.normal(nk(), (P,), jnp.float32) * 0.1
    pos_emb_w = jax.random.normal(nk(), (P, pos_emb_size), jnp.float32) * 0.1
    pos_emb_w = pos_emb_w.at[pos_vocab_size].set(0.0)  # padding_idx row
    fc2_w = jax.random.normal(nk(), (rnn_size + pos_emb_size, V), jnp.float32) * 0.1
    fc2_b = jax.random.normal(nk(), (V,), jnp.float32) * 0.1

    params = dict(gru=gru, fc1_w=fc1_w, fc1_b=fc1_b, pos_emb_w=pos_emb_w,
                  fc2_w=fc2_w, fc2_b=fc2_b)

    logits, last_hidden, pos_logits = decoder_forward(hidden, img_emb, c_emb, params)
    jax.block_until_ready((logits, last_hidden, pos_logits))

    ref_logits, ref_last_hidden, ref_pos_logits = reference_forward(
        hidden, img_emb, c_emb, params)

    assert logits.shape == (B, V)
    assert last_hidden.shape == (rnn_layers, B, rnn_size)
    assert pos_logits.shape == (B, P)
    assert jnp.allclose(last_hidden, ref_last_hidden, atol=1e-4, rtol=1e-4)
    assert jnp.allclose(pos_logits, ref_pos_logits, atol=1e-4, rtol=1e-4)
    # logits pass through the EUP approx-reciprocal softmax -> slightly looser tol
    assert jnp.allclose(logits, ref_logits, atol=2e-3, rtol=2e-3)

    print("KERNEL_OK")
</pallas_src>

<mosaic_0001>
module attributes {stable_mosaic.version = 11 : i64} {
  func.func @kernel(%arg0: i32, %arg1: memref<2x4xf32, #tpu.memory_space<vmem>>, %arg2: memref<2x32xf32, #tpu.memory_space<vmem>>, %arg3: memref<2x2x32xf32, #tpu.memory_space<vmem>>, %arg4: memref<4x96xf32, #tpu.memory_space<vmem>>, %arg5: memref<32x96xf32, #tpu.memory_space<vmem>>, %arg6: memref<32x96xf32, #tpu.memory_space<vmem>>, %arg7: memref<1x96xf32, #tpu.memory_space<vmem>>, %arg8: memref<1x96xf32, #tpu.memory_space<vmem>>, %arg9: memref<32x96xf32, #tpu.memory_space<vmem>>, %arg10: memref<32x96xf32, #tpu.memory_space<vmem>>, %arg11: memref<1x96xf32, #tpu.memory_space<vmem>>, %arg12: memref<1x96xf32, #tpu.memory_space<vmem>>, %arg13: memref<32x16xf32, #tpu.memory_space<vmem>>, %arg14: memref<1x16xf32, #tpu.memory_space<vmem>>, %arg15: memref<16x16xf32, #tpu.memory_space<vmem>>, %arg16: memref<32x64xf32, #tpu.memory_space<vmem>>, %arg17: memref<16x64xf32, #tpu.memory_space<vmem>>, %arg18: memref<1x64xf32, #tpu.memory_space<vmem>>, %arg19: memref<2x64xf32, #tpu.memory_space<vmem>>, %arg20: memref<2x2x32xf32, #tpu.memory_space<vmem>>, %arg21: memref<2x16xf32, #tpu.memory_space<vmem>>) attributes {dimension_semantics = [#tpu.dimension_semantics<parallel>], iteration_bounds = array<i64: 1>, scalar_prefetch = 0 : i64, scratch_operands = 0 : i64, tpu.core_type = #tpu.core_type<tc>, window_params = [{transform_indices = @transform_0, window_bounds = array<i64: 2, 4>}, {transform_indices = @transform_1, window_bounds = array<i64: 2, 32>}, {transform_indices = @transform_2, window_bounds = array<i64: 2, 2, 32>}, {pipeline_mode = #tpu.pipeline_mode<synchronous>, transform_indices = @transform_3, window_bounds = array<i64: 4, 96>}, {pipeline_mode = #tpu.pipeline_mode<synchronous>, transform_indices = @transform_4, window_bounds = array<i64: 32, 96>}, {pipeline_mode = #tpu.pipeline_mode<synchronous>, transform_indices = @transform_5, window_bounds = array<i64: 32, 96>}, {pipeline_mode = #tpu.pipeline_mode<synchronous>, transform_indices = @transform_6, window_bounds = array<i64: 1, 96>}, {pipeline_mode = #tpu.pipeline_mode<synchronous>, transform_indices = @transform_7, window_bounds = array<i64: 1, 96>}, {pipeline_mode = #tpu.pipeline_mode<synchronous>, transform_indices = @transform_8, window_bounds = array<i64: 32, 96>}, {pipeline_mode = #tpu.pipeline_mode<synchronous>, transform_indices = @transform_9, window_bounds = array<i64: 32, 96>}, {pipeline_mode = #tpu.pipeline_mode<synchronous>, transform_indices = @transform_10, window_bounds = array<i64: 1, 96>}, {pipeline_mode = #tpu.pipeline_mode<synchronous>, transform_indices = @transform_11, window_bounds = array<i64: 1, 96>}, {pipeline_mode = #tpu.pipeline_mode<synchronous>, transform_indices = @transform_12, window_bounds = array<i64: 32, 16>}, {pipeline_mode = #tpu.pipeline_mode<synchronous>, transform_indices = @transform_13, window_bounds = array<i64: 1, 16>}, {pipeline_mode = #tpu.pipeline_mode<synchronous>, transform_indices = @transform_14, window_bounds = array<i64: 16, 16>}, {pipeline_mode = #tpu.pipeline_mode<synchronous>, transform_indices = @transform_15, window_bounds = array<i64: 32, 64>}, {pipeline_mode = #tpu.pipeline_mode<synchronous>, transform_indices = @transform_16, window_bounds = array<i64: 16, 64>}, {pipeline_mode = #tpu.pipeline_mode<synchronous>, transform_indices = @transform_17, window_bounds = array<i64: 1, 64>}, {transform_indices = @transform_18, window_bounds = array<i64: 2, 64>}, {transform_indices = @transform_19, window_bounds = array<i64: 2, 2, 32>}, {transform_indices = @transform_20, window_bounds = array<i64: 2, 16>}]} {
    %c0 = arith.constant 0 : index
    %c0_0 = arith.constant 0 : index
    %0 = vector.load %arg1[%c0, %c0_0] : memref<2x4xf32, #tpu.memory_space<vmem>>, vector<2x4xf32>
    %c0_1 = arith.constant 0 : index
    %c0_2 = arith.constant 0 : index
    %1 = vector.load %arg4[%c0_1, %c0_2] : memref<4x96xf32, #tpu.memory_space<vmem>>, vector<4x96xf32>
    %cst = arith.constant dense<0.000000e+00> : vector<2x96xf32>
    %2 = tpu.matmul %0, %1, %cst {dimension_numbers = #tpu.dot_dimension_numbers<[1], [0], [0], [1], [0, 0, 1, 1], [], []>} : vector<2x4xf32>, vector<4x96xf32>, vector<2x96xf32> -> vector<2x96xf32>
    %c0_3 = arith.constant 0 : index
    %c0_4 = arith.constant 0 : index
    %3 = vector.load %arg2[%c0_3, %c0_4] : memref<2x32xf32, #tpu.memory_space<vmem>>, vector<2x32xf32>
    %c0_5 = arith.constant 0 : index
    %c0_6 = arith.constant 0 : index
    %4 = vector.load %arg5[%c0_5, %c0_6] : memref<32x96xf32, #tpu.memory_space<vmem>>, vector<32x96xf32>
    %cst_7 = arith.constant dense<0.000000e+00> : vector<2x96xf32>
    %5 = tpu.matmul %3, %4, %cst_7 {dimension_numbers = #tpu.dot_dimension_numbers<[1], [0], [0], [1], [0, 0, 1, 1], [], []>} : vector<2x32xf32>, vector<32x96xf32>, vector<2x96xf32> -> vector<2x96xf32>
    %6 = arith.addf %2, %5 : vector<2x96xf32>
    %c0_8 = arith.constant 0 : index
    %c0_9 = arith.constant 0 : index
    %7 = vector.load %arg7[%c0_8, %c0_9] : memref<1x96xf32, #tpu.memory_space<vmem>>, vector<1x96xf32>
    %8 = vector.broadcast %7 : vector<1x96xf32> to vector<2x96xf32>
    %9 = arith.addf %6, %8 : vector<2x96xf32>
    %c0_10 = arith.constant 0 : index
    %c0_11 = arith.constant 0 : index
    %c0_12 = arith.constant 0 : index
    %10 = vector.load %arg3[%c0_10, %c0_11, %c0_12] : memref<2x2x32xf32, #tpu.memory_space<vmem>>, vector<1x2x32xf32>
    %11 = vector.shape_cast %10 : vector<1x2x32xf32> to vector<2x32xf32>
    %c0_13 = arith.constant 0 : index
    %c0_14 = arith.constant 0 : index
    %12 = vector.load %arg6[%c0_13, %c0_14] : memref<32x96xf32, #tpu.memory_space<vmem>>, vector<32x96xf32>
    %cst_15 = arith.constant dense<0.000000e+00> : vector<2x96xf32>
    %13 = tpu.matmul %11, %12, %cst_15 {dimension_numbers = #tpu.dot_dimension_numbers<[1], [0], [0], [1], [0, 0, 1, 1], [], []>} : vector<2x32xf32>, vector<32x96xf32>, vector<2x96xf32> -> vector<2x96xf32>
    %c0_16 = arith.constant 0 : index
    %c0_17 = arith.constant 0 : index
    %14 = vector.load %arg8[%c0_16, %c0_17] : memref<1x96xf32, #tpu.memory_space<vmem>>, vector<1x96xf32>
    %15 = vector.broadcast %14 : vector<1x96xf32> to vector<2x96xf32>
    %16 = arith.addf %13, %15 : vector<2x96xf32>
    %17 = vector.extract_strided_slice %9 {offsets = [0, 0], sizes = [2, 32], strides = [1, 1]} : vector<2x96xf32> to vector<2x32xf32>
    %18 = vector.extract_strided_slice %16 {offsets = [0, 0], sizes = [2, 32], strides = [1, 1]} : vector<2x96xf32> to vector<2x32xf32>
    %19 = arith.addf %17, %18 : vector<2x32xf32>
    %20 = arith.negf %19 : vector<2x32xf32>
    %21 = math.exp %20 : vector<2x32xf32>
    %cst_18 = arith.constant 1.000000e+00 : f32
    %22 = vector.broadcast %cst_18 : f32 to vector<2x32xf32>
    %23 = arith.addf %22, %21 : vector<2x32xf32>
    %24 = arith.divf %22, %23 : vector<2x32xf32>
    %25 = vector.extract_strided_slice %9 {offsets = [0, 32], sizes = [2, 32], strides = [1, 1]} : vector<2x96xf32> to vector<2x32xf32>
    %26 = vector.extract_strided_slice %16 {offsets = [0, 32], sizes = [2, 32], strides = [1, 1]} : vector<2x96xf32> to vector<2x32xf32>
    %27 = arith.addf %25, %26 : vector<2x32xf32>
    %28 = arith.negf %27 : vector<2x32xf32>
    %29 = math.exp %28 : vector<2x32xf32>
    %cst_19 = arith.constant 1.000000e+00 : f32
    %30 = vector.broadcast %cst_19 : f32 to vector<2x32xf32>
    %31 = arith.addf %30, %29 : vector<2x32xf32>
    %32 = arith.divf %30, %31 : vector<2x32xf32>
    %33 = vector.extract_strided_slice %9 {offsets = [0, 64], sizes = [2, 32], strides = [1, 1]} : vector<2x96xf32> to vector<2x32xf32>
    %34 = vector.extract_strided_slice %16 {offsets = [0, 64], sizes = [2, 32], strides = [1, 1]} : vector<2x96xf32> to vector<2x32xf32>
    %35 = arith.mulf %24, %34 : vector<2x32xf32>
    %36 = arith.addf %33, %35 : vector<2x32xf32>
    %37 = math.tanh %36 : vector<2x32xf32>
    %cst_20 = arith.constant 1.000000e+00 : f32
    %38 = vector.broadcast %cst_20 : f32 to vector<2x32xf32>
    %39 = arith.subf %38, %32 : vector<2x32xf32>
    %40 = arith.mulf %39, %37 : vector<2x32xf32>
    %41 = arith.mulf %32, %11 : vector<2x32xf32>
    %42 = arith.addf %40, %41 : vector<2x32xf32>
    %c0_21 = arith.constant 0 : index
    %c0_22 = arith.constant 0 : index
    %c0_23 = arith.constant 0 : index
    %43 = vector.load %arg20[%c0_21, %c0_22, %c0_23] : memref<2x2x32xf32, #tpu.memory_space<vmem>>, vector<1x2x32xf32>
    %44 = vector.shape_cast %43 : vector<1x2x32xf32> to vector<2x32xf32>
    %45 = vector.shape_cast %42 : vector<2x32xf32> to vector<1x2x32xf32>
    tpu.vector_store %arg20[%c0_21, %c0_22, %c0_23], %45 {strides = array<i32>} : memref<2x2x32xf32, #tpu.memory_space<vmem>>, vector<1x2x32xf32>,
    %c0_24 = arith.constant 0 : index
    %c0_25 = arith.constant 0 : index
    %46 = vector.load %arg9[%c0_24, %c0_25] : memref<32x96xf32, #tpu.memory_space<vmem>>, vector<32x96xf32>
    %cst_26 = arith.constant dense<0.000000e+00> : vector<2x96xf32>
    %47 = tpu.matmul %42, %46, %cst_26 {dimension_numbers = #tpu.dot_dimension_numbers<[1], [0], [0], [1], [0, 0, 1, 1], [], []>} : vector<2x32xf32>, vector<32x96xf32>, vector<2x96xf32> -> vector<2x96xf32>
    %c0_27 = arith.constant 0 : index
    %c0_28 = arith.constant 0 : index
    %48 = vector.load %arg11[%c0_27, %c0_28] : memref<1x96xf32, #tpu.memory_space<vmem>>, vector<1x96xf32>
    %49 = vector.broadcast %48 : vector<1x96xf32> to vector<2x96xf32>
    %50 = arith.addf %47, %49 : vector<2x96xf32>
    %c1 = arith.constant 1 : index
    %c0_29 = arith.constant 0 : index
    %c0_30 = arith.constant 0 : index
    %51 = vector.load %arg3[%c1, %c0_29, %c0_30] : memref<2x2x32xf32, #tpu.memory_space<vmem>>, vector<1x2x32xf32>
    %52 = vector.shape_cast %51 : vector<1x2x32xf32> to vector<2x32xf32>
    %c0_31 = arith.constant 0 : index
    %c0_32 = arith.constant 0 : index
    %53 = vector.load %arg10[%c0_31, %c0_32] : memref<32x96xf32, #tpu.memory_space<vmem>>, vector<32x96xf32>
    %cst_33 = arith.constant dense<0.000000e+00> : vector<2x96xf32>
    %54 = tpu.matmul %52, %53, %cst_33 {dimension_numbers = #tpu.dot_dimension_numbers<[1], [0], [0], [1], [0, 0, 1, 1], [], []>} : vector<2x32xf32>, vector<32x96xf32>, vector<2x96xf32> -> vector<2x96xf32>
    %c0_34 = arith.constant 0 : index
    %c0_35 = arith.constant 0 : index
    %55 = vector.load %arg12[%c0_34, %c0_35] : memref<1x96xf32, #tpu.memory_space<vmem>>, vector<1x96xf32>
    %56 = vector.broadcast %55 : vector<1x96xf32> to vector<2x96xf32>
    %57 = arith.addf %54, %56 : vector<2x96xf32>
    %58 = vector.extract_strided_slice %50 {offsets = [0, 0], sizes = [2, 32], strides = [1, 1]} : vector<2x96xf32> to vector<2x32xf32>
    %59 = vector.extract_strided_slice %57 {offsets = [0, 0], sizes = [2, 32], strides = [1, 1]} : vector<2x96xf32> to vector<2x32xf32>
    %60 = arith.addf %58, %59 : vector<2x32xf32>
    %61 = arith.negf %60 : vector<2x32xf32>
    %62 = math.exp %61 : vector<2x32xf32>
    %cst_36 = arith.constant 1.000000e+00 : f32
    %63 = vector.broadcast %cst_36 : f32 to vector<2x32xf32>
    %64 = arith.addf %63, %62 : vector<2x32xf32>
    %65 = arith.divf %63, %64 : vector<2x32xf32>
    %66 = vector.extract_strided_slice %50 {offsets = [0, 32], sizes = [2, 32], strides = [1, 1]} : vector<2x96xf32> to vector<2x32xf32>
    %67 = vector.extract_strided_slice %57 {offsets = [0, 32], sizes = [2, 32], strides = [1, 1]} : vector<2x96xf32> to vector<2x32xf32>
    %68 = arith.addf %66, %67 : vector<2x32xf32>
    %69 = arith.negf %68 : vector<2x32xf32>
    %70 = math.exp %69 : vector<2x32xf32>
    %cst_37 = arith.constant 1.000000e+00 : f32
    %71 = vector.broadcast %cst_37 : f32 to vector<2x32xf32>
    %72 = arith.addf %71, %70 : vector<2x32xf32>
    %73 = arith.divf %71, %72 : vector<2x32xf32>
    %74 = vector.extract_strided_slice %50 {offsets = [0, 64], sizes = [2, 32], strides = [1, 1]} : vector<2x96xf32> to vector<2x32xf32>
    %75 = vector.extract_strided_slice %57 {offsets = [0, 64], sizes = [2, 32], strides = [1, 1]} : vector<2x96xf32> to vector<2x32xf32>
    %76 = arith.mulf %65, %75 : vector<2x32xf32>
    %77 = arith.addf %74, %76 : vector<2x32xf32>
    %78 = math.tanh %77 : vector<2x32xf32>
    %cst_38 = arith.constant 1.000000e+00 : f32
    %79 = vector.broadcast %cst_38 : f32 to vector<2x32xf32>
    %80 = arith.subf %79, %73 : vector<2x32xf32>
    %81 = arith.mulf %80, %78 : vector<2x32xf32>
    %82 = arith.mulf %73, %52 : vector<2x32xf32>
    %83 = arith.addf %81, %82 : vector<2x32xf32>
    %c1_39 = arith.constant 1 : index
    %c0_40 = arith.constant 0 : index
    %c0_41 = arith.constant 0 : index
    %84 = vector.load %arg20[%c1_39, %c0_40, %c0_41] : memref<2x2x32xf32, #tpu.memory_space<vmem>>, vector<1x2x32xf32>
    %85 = vector.shape_cast %84 : vector<1x2x32xf32> to vector<2x32xf32>
    %86 = vector.shape_cast %83 : vector<2x32xf32> to vector<1x2x32xf32>
    tpu.vector_store %arg20[%c1_39, %c0_40, %c0_41], %86 {strides = array<i32>} : memref<2x2x32xf32, #tpu.memory_space<vmem>>, vector<1x2x32xf32>,
    %c0_42 = arith.constant 0 : index
    %c0_43 = arith.constant 0 : index
    %87 = vector.load %arg13[%c0_42, %c0_43] : memref<32x16xf32, #tpu.memory_space<vmem>>, vector<32x16xf32>
    %cst_44 = arith.constant dense<0.000000e+00> : vector<2x16xf32>
    %88 = tpu.matmul %83, %87, %cst_44 {dimension_numbers = #tpu.dot_dimension_numbers<[1], [0], [0], [1], [0, 0, 1, 1], [], []>} : vector<2x32xf32>, vector<32x16xf32>, vector<2x16xf32> -> vector<2x16xf32>
    %c0_45 = arith.constant 0 : index
    %c0_46 = arith.constant 0 : index
    %89 = vector.load %arg14[%c0_45, %c0_46] : memref<1x16xf32, #tpu.memory_space<vmem>>, vector<1x16xf32>
    %90 = vector.broadcast %89 : vector<1x16xf32> to vector<2x16xf32>
    %91 = arith.addf %88, %90 : vector<2x16xf32>
    %c0_47 = arith.constant 0 : index
    %c0_48 = arith.constant 0 : index
    %92 = vector.load %arg21[%c0_47, %c0_48] : memref<2x16xf32, #tpu.memory_space<vmem>>, vector<2x16xf32>
    tpu.vector_store %arg21[%c0_47, %c0_48], %91 {strides = array<i32>} : memref<2x16xf32, #tpu.memory_space<vmem>>, vector<2x16xf32>,
    %cst_49 = arith.constant dense<0xFF800000> : vector<2xf32>
    %93 = vector.multi_reduction <maximumf>, %91, %cst_49 [1] : vector<2x16xf32> to vector<2xf32>
    %94 = vector.shape_cast %93 : vector<2xf32> to vector<2x1xf32>
    %95 = vector.broadcast %94 : vector<2x1xf32> to vector<2x16xf32>
    %96 = arith.subf %91, %95 : vector<2x16xf32>
    %97 = math.exp %96 : vector<2x16xf32>
    %cst_50 = arith.constant dense<0.000000e+00> : vector<2xf32>
    %98 = vector.multi_reduction <add>, %97, %cst_50 [1] : vector<2x16xf32> to vector<2xf32>
    %99 = vector.shape_cast %98 : vector<2xf32> to vector<2x1xf32>
    %100 = tpu.reciprocal %99 {approx = true} : vector<2x1xf32> -> vector<2x1xf32>
    %101 = vector.broadcast %100 : vector<2x1xf32> to vector<2x16xf32>
    %102 = arith.mulf %97, %101 : vector<2x16xf32>
    %c0_51 = arith.constant 0 : index
    %c0_52 = arith.constant 0 : index
    %103 = vector.load %arg15[%c0_51, %c0_52] : memref<16x16xf32, #tpu.memory_space<vmem>>, vector<16x16xf32>
    %cst_53 = arith.constant dense<0.000000e+00> : vector<2x16xf32>
    %104 = tpu.matmul %102, %103, %cst_53 {dimension_numbers = #tpu.dot_dimension_numbers<[1], [0], [0], [1], [0, 0, 1, 1], [], []>} : vector<2x16xf32>, vector<16x16xf32>, vector<2x16xf32> -> vector<2x16xf32>
    %c0_54 = arith.constant 0 : index
    %c0_55 = arith.constant 0 : index
    %105 = vector.load %arg16[%c0_54, %c0_55] : memref<32x64xf32, #tpu.memory_space<vmem>>, vector<32x64xf32>
    %cst_56 = arith.constant dense<0.000000e+00> : vector<2x64xf32>
    %106 = tpu.matmul %83, %105, %cst_56 {dimension_numbers = #tpu.dot_dimension_numbers<[1], [0], [0], [1], [0, 0, 1, 1], [], []>} : vector<2x32xf32>, vector<32x64xf32>, vector<2x64xf32> -> vector<2x64xf32>
    %c0_57 = arith.constant 0 : index
    %c0_58 = arith.constant 0 : index
    %107 = vector.load %arg17[%c0_57, %c0_58] : memref<16x64xf32, #tpu.memory_space<vmem>>, vector<16x64xf32>
    %cst_59 = arith.constant dense<0.000000e+00> : vector<2x64xf32>
    %108 = tpu.matmul %104, %107, %cst_59 {dimension_numbers = #tpu.dot_dimension_numbers<[1], [0], [0], [1], [0, 0, 1, 1], [], []>} : vector<2x16xf32>, vector<16x64xf32>, vector<2x64xf32> -> vector<2x64xf32>
    %109 = arith.addf %106, %108 : vector<2x64xf32>
    %c0_60 = arith.constant 0 : index
    %c0_61 = arith.constant 0 : index
    %110 = vector.load %arg18[%c0_60, %c0_61] : memref<1x64xf32, #tpu.memory_space<vmem>>, vector<1x64xf32>
    %111 = vector.broadcast %110 : vector<1x64xf32> to vector<2x64xf32>
    %112 = arith.addf %109, %111 : vector<2x64xf32>
    %c0_62 = arith.constant 0 : index
    %c0_63 = arith.constant 0 : index
    %113 = vector.load %arg19[%c0_62, %c0_63] : memref<2x64xf32, #tpu.memory_space<vmem>>, vector<2x64xf32>
    tpu.vector_store %arg19[%c0_62, %c0_63], %112 {strides = array<i32>} : memref<2x64xf32, #tpu.memory_space<vmem>>, vector<2x64xf32>,
    return
  }
  func.func @transform_0(%arg0: i32) -> (i32, i32) {
    %c0_i32 = arith.constant 0 : i32
    %c0_i32_0 = arith.constant 0 : i32
    return %arg0, %c0_i32 : i32, i32
  }
  func.func @transform_1(%arg0: i32) -> (i32, i32) {
    %c0_i32 = arith.constant 0 : i32
    %c0_i32_0 = arith.constant 0 : i32
    return %arg0, %c0_i32 : i32, i32
  }
  func.func @transform_2(%arg0: i32) -> (i32, i32, i32) {
    %c0_i32 = arith.constant 0 : i32
    %c0_i32_0 = arith.constant 0 : i32
    %c0_i32_1 = arith.constant 0 : i32
    return %c0_i32, %arg0, %c0_i32_0 : i32, i32, i32
  }
  func.func @transform_3(%arg0: i32) -> (i32, i32) {
    %c0_i32 = arith.constant 0 : i32
    %c0_i32_0 = arith.constant 0 : i32
    %c0_i32_1 = arith.constant 0 : i32
    return %c0_i32, %c0_i32_0 : i32, i32
  }
  func.func @transform_4(%arg0: i32) -> (i32, i32) {
    %c0_i32 = arith.constant 0 : i32
    %c0_i32_0 = arith.constant 0 : i32
    %c0_i32_1 = arith.constant 0 : i32
    return %c0_i32, %c0_i32_0 : i32, i32
  }
  func.func @transform_5(%arg0: i32) -> (i32, i32) {
    %c0_i32 = arith.constant 0 : i32
    %c0_i32_0 = arith.constant 0 : i32
    %c0_i32_1 = arith.constant 0 : i32
    return %c0_i32, %c0_i32_0 : i32, i32
  }
  func.func @transform_6(%arg0: i32) -> (i32, i32) {
    %c0_i32 = arith.constant 0 : i32
    %c0_i32_0 = arith.constant 0 : i32
    %c0_i32_1 = arith.constant 0 : i32
    return %c0_i32, %c0_i32_0 : i32, i32
  }
  func.func @transform_7(%arg0: i32) -> (i32, i32) {
    %c0_i32 = arith.constant 0 : i32
    %c0_i32_0 = arith.constant 0 : i32
    %c0_i32_1 = arith.constant 0 : i32
    return %c0_i32, %c0_i32_0 : i32, i32
  }
  func.func @transform_8(%arg0: i32) -> (i32, i32) {
    %c0_i32 = arith.constant 0 : i32
    %c0_i32_0 = arith.constant 0 : i32
    %c0_i32_1 = arith.constant 0 : i32
    return %c0_i32, %c0_i32_0 : i32, i32
  }
  func.func @transform_9(%arg0: i32) -> (i32, i32) {
    %c0_i32 = arith.constant 0 : i32
    %c0_i32_0 = arith.constant 0 : i32
    %c0_i32_1 = arith.constant 0 : i32
    return %c0_i32, %c0_i32_0 : i32, i32
  }
  func.func @transform_10(%arg0: i32) -> (i32, i32) {
    %c0_i32 = arith.constant 0 : i32
    %c0_i32_0 = arith.constant 0 : i32
    %c0_i32_1 = arith.constant 0 : i32
    return %c0_i32, %c0_i32_0 : i32, i32
  }
  func.func @transform_11(%arg0: i32) -> (i32, i32) {
    %c0_i32 = arith.constant 0 : i32
    %c0_i32_0 = arith.constant 0 : i32
    %c0_i32_1 = arith.constant 0 : i32
    return %c0_i32, %c0_i32_0 : i32, i32
  }
  func.func @transform_12(%arg0: i32) -> (i32, i32) {
    %c0_i32 = arith.constant 0 : i32
    %c0_i32_0 = arith.constant 0 : i32
    %c0_i32_1 = arith.constant 0 : i32
    return %c0_i32, %c0_i32_0 : i32, i32
  }
  func.func @transform_13(%arg0: i32) -> (i32, i32) {
    %c0_i32 = arith.constant 0 : i32
    %c0_i32_0 = arith.constant 0 : i32
    %c0_i32_1 = arith.constant 0 : i32
    return %c0_i32, %c0_i32_0 : i32, i32
  }
  func.func @transform_14(%arg0: i32) -> (i32, i32) {
    %c0_i32 = arith.constant 0 : i32
    %c0_i32_0 = arith.constant 0 : i32
    %c0_i32_1 = arith.constant 0 : i32
    return %c0_i32, %c0_i32_0 : i32, i32
  }
  func.func @transform_15(%arg0: i32) -> (i32, i32) {
    %c0_i32 = arith.constant 0 : i32
    %c0_i32_0 = arith.constant 0 : i32
    %c0_i32_1 = arith.constant 0 : i32
    return %c0_i32, %c0_i32_0 : i32, i32
  }
  func.func @transform_16(%arg0: i32) -> (i32, i32) {
    %c0_i32 = arith.constant 0 : i32
    %c0_i32_0 = arith.constant 0 : i32
    %c0_i32_1 = arith.constant 0 : i32
    return %c0_i32, %c0_i32_0 : i32, i32
  }
  func.func @transform_17(%arg0: i32) -> (i32, i32) {
    %c0_i32 = arith.constant 0 : i32
    %c0_i32_0 = arith.constant 0 : i32
    %c0_i32_1 = arith.constant 0 : i32
    return %c0_i32, %c0_i32_0 : i32, i32
  }
  func.func @transform_18(%arg0: i32) -> (i32, i32) {
    %c0_i32 = arith.constant 0 : i32
    %c0_i32_0 = arith.constant 0 : i32
    return %arg0, %c0_i32 : i32, i32
  }
  func.func @transform_19(%arg0: i32) -> (i32, i32, i32) {
    %c0_i32 = arith.constant 0 : i32
    %c0_i32_0 = arith.constant 0 : i32
    %c0_i32_1 = arith.constant 0 : i32
    return %c0_i32, %arg0, %c0_i32_0 : i32, i32, i32
  }
  func.func @transform_20(%arg0: i32) -> (i32, i32) {
    %c0_i32 = arith.constant 0 : i32
    %c0_i32_0 = arith.constant 0 : i32
    return %arg0, %c0_i32 : i32, i32
  }
}

</mosaic_0001>

<bundles_post_ra>
// kernel: tpu_custom_call.1
= control target key start
LH: loop header
LB: loop body
LE: loop exit
PB: predicated region body
PF: predicated region fallthrough
CT: control target
= control target key end

     0   :  { %s2091_s0 = inlined_call_operand.hbm [shape: f32[2,4], index: 0, kind: input, shape index: {}]   ;;  %s2092_s1 = inlined_call_operand.hbm [shape: f32[2,32], index: 1, kind: input, shape index: {}]   ;;  %s2093_s2 = inlined_call_operand.hbm [shape: f32[2,2,32], index: 2, kind: input, shape index: {}]   ;;  %s2094_s3 = inlined_call_operand.hbm [shape: f32[4,96], index: 3, kind: input, shape index: {}]   ;;  %s2095_s4 = inlined_call_operand.vmem [shape: f32[32,96], index: 4, kind: input, shape index: {}]   ;;  %s2096_s5 = inlined_call_operand.vmem [shape: f32[32,96], index: 5, kind: input, shape index: {}]   ;;  %s2097_s6 = inlined_call_operand.vmem [shape: f32[1,96], index: 6, kind: input, shape index: {}]   ;;  %s2098_s7 = inlined_call_operand.hbm [shape: f32[1,96], index: 7, kind: input, shape index: {}]   ;;  %s2099_s8 = inlined_call_operand.hbm [shape: f32[32,96], index: 8, kind: input, shape index: {}]   ;;  %s2100_s9 = inlined_call_operand.hbm [shape: f32[32,96], index: 9, kind: input, shape index: {}]   ;;  %s2101_s10 = inlined_call_operand.hbm [shape: f32[1,96], index: 10, kind: input, shape index: {}]   ;;  %s2102_s11 = inlined_call_operand.hbm [shape: f32[1,96], index: 11, kind: input, shape index: {}]   ;;  %s2103_s12 = inlined_call_operand.vmem [shape: f32[32,16], index: 12, kind: input, shape index: {}]   ;;  %s2104_s13 = inlined_call_operand.hbm [shape: f32[1,16], index: 13, kind: input, shape index: {}]   ;;  %s2105_s14 = inlined_call_operand.hbm [shape: f32[16,16], index: 14, kind: input, shape index: {}]   ;;  %s2106_s15 = inlined_call_operand.vmem [shape: f32[32,64], index: 15, kind: input, shape index: {}]   ;;  %s2107_s16 = inlined_call_operand.hbm [shape: f32[16,64], index: 16, kind: input, shape index: {}]   ;;  %s2108_s17 = inlined_call_operand.vmem [shape: f32[1,64], index: 17, kind: input, shape index: {}]   ;;  %s2109_s18 = inlined_call_operand.hbm [shape: f32[2,64], index: 18, kind: output, shape index: {0}]   ;;  %s2110_s19 = inlined_call_operand.hbm [shape: f32[2,2,32], index: 19, kind: output, shape index: {1}]   ;;  %s2111_s20 = inlined_call_operand.hbm [shape: f32[2,16], index: 20, kind: output, shape index: {2}]  }
   0x1   :  { %2118 = sst [smem:[#allocation35_spill]] %s2091_s0 }
   0x2   :  { %2119 = sst [smem:[#allocation36_spill]] %s2092_s1 }
   0x3   :  { %2120 = sst [smem:[#allocation37_spill]] %s2093_s2 }
   0x4   :  { %2121 = sst [smem:[#allocation38_spill]] %s2094_s3 }
   0x5   :  { %2122 = sst [smem:[#allocation39_spill]] %s2095_s4 }
   0x6   :  { %2123 = sst [smem:[#allocation40_spill]] %s2109_s18 }
   0x7   :  { %26 = vsyncpa [#allocation3], 0 }
   0x8   :  { %27 = vsyncpa [#allocation6], 0 }
   0x9   :  { %28 = vsyncpa [#allocation9], 0 }
   0xa   :  { %29 = vsyncpa [#allocation12], 0 }
   0xb   :  { %30 = vsyncpa [#allocation15], 0 }
   0xc   :  { %31 = vsyncpa [#allocation18], 0 }
   0xd   :  { %32 = vsyncpa [#allocation21], 0 }
   0xe   :  { %33 = vsyncpa [#allocation4], 0 }
   0xf   :  { %34 = vsyncpa [#allocation24], 0  ;;  %s1656_s1 = smov [#allocation5]   ;;  %s1657_s23 = smov [#allocation8]  }
  0x10   :  { %s51_s22 = sshll.u32 %s1656_s1, 4  ;;  %s73_s24 = sshll.u32 %s1657_s23, 4  ;;  %s52_s22 = int_to_ptr.vmem [resolvable:$true] %s51_s22  ;;  %s74_s24 = int_to_ptr.vmem [resolvable:$true] %s73_s24 }
  0x11   :  { %s2124_s3 = sld [smem:[#allocation36_spill]] }
  0x17   :  { %s1308_s26 = scalar_lea.hbm %s2124_s3, 32 }
  0x18   :  { %p1309_p0 = scmp.ne.s32.totalorder %s2124_s3, %s1308_s26  ;;  %p1312_p1 = scmp.lt.u32.totalorder %s1308_s26, %s2124_s3 }
  0x1a   :  { %p1314_p2 = pnand %p1312_p1, %p1309_p0 }
  0x1c   :  { %1317 = shalt.err (!%p1314_p2)
}
  0x1d   :  { %s1318_s30 = scalar_lea.vmem %s52_s22, 32  ;;  %p1323_p4 = scmp.lt.s32.totalorder %s52_s22, %s52_s22 }
  0x1e   :  { %p1319_p3 = scmp.ne.s32.totalorder %s52_s22, %s1318_s30  ;;  %p1324_p5 = scmp.lt.s32.totalorder %s1318_s30, %s1318_s30 }
  0x20   :  { %p1325_p6 = por %p1324_p5, %p1323_p4 }
  0x22   :  { %p1326_p7 = pnand %p1325_p6, %p1319_p3 }
  0x24   :  { %1329 = shalt.err (!%p1326_p7)
}
  0x25   :  { %54 = dma.hbm_to_vmem [thread:$0]  %s2124_s3, 32, %s52_s22, [#allocation6]  }
  0x26   :  { %s2125_s2 = sld [smem:[#allocation38_spill]] }
  0x2c   :  { %s1330_s25 = scalar_lea.hbm %s2125_s2, 64 }
  0x2d   :  { %p1331_p8 = scmp.ne.s32.totalorder %s2125_s2, %s1330_s25  ;;  %p1334_p9 = scmp.lt.u32.totalorder %s1330_s25, %s2125_s2 }
  0x2f   :  { %p1336_p10 = pnand %p1334_p9, %p1331_p8 }
  0x31   :  { %1339 = shalt.err (!%p1336_p10)
}
  0x32   :  { %s1340_s29 = scalar_lea.vmem %s74_s24, 64  ;;  %p1345_p12 = scmp.lt.s32.totalorder %s74_s24, %s74_s24 }
  0x33   :  { %p1341_p11 = scmp.ne.s32.totalorder %s74_s24, %s1340_s29  ;;  %p1346_p13 = scmp.lt.s32.totalorder %s1340_s29, %s1340_s29 }
  0x35   :  { %p1347_p0 = por %p1346_p13, %p1345_p12 }
  0x37   :  { %p1348_p1 = pnand %p1347_p0, %p1341_p11 }
  0x39   :  { %1351 = shalt.err (!%p1348_p1)
}
  0x3a   :  { %76 = dma.hbm_to_vmem [thread:$0]  %s2125_s2, 64, %s74_s24, [#allocation9]  }
  0x3b   :  { %s1658_s30 = smov [#allocation11]   ;;  %s1352_s23 = scalar_lea.hbm %s2099_s8, 512 }
  0x3c   :  { %s98_s0 = sshll.u32 %s1658_s30, 4  ;;  %p1353_p2 = scmp.ne.s32.totalorder %s2099_s8, %s1352_s23  ;;  %s99_s0 = int_to_ptr.vmem [resolvable:$true] %s98_s0 }
  0x3d   :  { %p1356_p3 = scmp.lt.u32.totalorder %s1352_s23, %s2099_s8 }
  0x3f   :  { %p1358_p4 = pnand %p1356_p3, %p1353_p2 }
  0x41   :  { %1361 = shalt.err (!%p1358_p4)
}
  0x42   :  { %s1362_s4 = scalar_lea.vmem %s99_s0, 512  ;;  %p1367_p6 = scmp.lt.s32.totalorder %s99_s0, %s99_s0 }
  0x43   :  { %p1363_p5 = scmp.ne.s32.totalorder %s99_s0, %s1362_s4  ;;  %p1368_p7 = scmp.lt.s32.totalorder %s1362_s4, %s1362_s4 }
  0x45   :  { %p1369_p8 = por %p1368_p7, %p1367_p6 }
  0x47   :  { %p1370_p9 = pnand %p1369_p8, %p1363_p5 }
  0x49   :  { %1373 = shalt.err (!%p1370_p9)
}
  0x4a   :  { %s1659_s24 = smov 128   ;;  %s1660_s2 = smov 8  }
  0x4b   :  { %104 = dma.hbm_to_vmem [thread:$0]  %s2099_s8, 512, %s99_s0, [#allocation12], %s1659_s24, %s1659_s24, %s1660_s2  }
  0x4c   :  { %s1661_s3 = smov [#allocation14]   ;;  %s1662_s21 = smov [#allocation17]  }
  0x4d   :  { %s123_s30 = sshll.u32 %s1661_s3, 4  ;;  %s145_s1 = sshll.u32 %s1662_s21, 4  ;;  %s124_s30 = int_to_ptr.vmem [resolvable:$true] %s123_s30  ;;  %s146_s1 = int_to_ptr.vmem [resolvable:$true] %s145_s1 }
  0x4e   :  { %s1374_s27 = scalar_lea.hbm %s2101_s10, 16 }
  0x4f   :  { %p1375_p10 = scmp.ne.s32.totalorder %s2101_s10, %s1374_s27  ;;  %p1378_p11 = scmp.lt.u32.totalorder %s1374_s27, %s2101_s10 }
  0x51   :  { %p1380_p12 = pnand %p1378_p11, %p1375_p10 }
  0x53   :  { %1383 = shalt.err (!%p1380_p12)
}
  0x54   :  { %s1384_s8 = scalar_lea.vmem %s124_s30, 16  ;;  %s1388_s0 = scalar_lea.vmem %s124_s30, 32 }
  0x55   :  { %p1385_p13 = scmp.ne.s32.totalorder %s124_s30, %s1384_s8  ;;  %p1389_p0 = scmp.lt.s32.totalorder %s124_s30, %s124_s30 }
  0x56   :  { %p1390_p1 = scmp.lt.s32.totalorder %s1388_s0, %s1384_s8 }
  0x58   :  { %p1391_p2 = por %p1390_p1, %p1389_p0 }
  0x5a   :  { %p1392_p3 = pnand %p1391_p2, %p1385_p13 }
  0x5c   :  { %1395 = shalt.err (!%p1392_p3)
}
  0x5d   :  { %126 = dma.hbm_to_vmem [thread:$0]  %s2101_s10, 16, %s124_s30, [#allocation15]  }
  0x5e   :  { %s1396_s18 = scalar_lea.hbm %s2104_s13, 16 }
  0x5f   :  { %p1397_p4 = scmp.ne.s32.totalorder %s2104_s13, %s1396_s18  ;;  %p1400_p5 = scmp.lt.u32.totalorder %s1396_s18, %s2104_s13 }
  0x61   :  { %p1402_p6 = pnand %p1400_p5, %p1397_p4 }
  0x63   :  { %1405 = shalt.err (!%p1402_p6)
}
  0x64   :  { %s1406_s26 = scalar_lea.vmem %s146_s1, 16  ;;  %s1410_s4 = scalar_lea.vmem %s146_s1, 32 }
  0x65   :  { %p1407_p7 = scmp.ne.s32.totalorder %s146_s1, %s1406_s26  ;;  %p1411_p8 = scmp.lt.s32.totalorder %s146_s1, %s146_s1 }
  0x66   :  { %p1412_p9 = scmp.lt.s32.totalorder %s1410_s4, %s1406_s26 }
  0x68   :  { %p1413_p10 = por %p1412_p9, %p1411_p8 }
  0x6a   :  { %p1414_p11 = pnand %p1413_p10, %p1407_p7 }
  0x6c   :  { %1417 = shalt.err (!%p1414_p11)
}
  0x6d   :  { %148 = dma.hbm_to_vmem [thread:$0]  %s2104_s13, 16, %s146_s1, [#allocation18]  }
  0x6e   :  { %s1663_s8 = smov [#allocation2]   ;;  %s1664_s29 = smov [#allocation7]  }
  0x6f   :  { %s41_s0 = sshll.u32 %s1663_s8, 4  ;;  %s60_s22 = sshll.u32 %s1664_s29, 4  ;;  %s42_s0 = int_to_ptr.vmem [resolvable:$true] %s41_s0  ;;  %s61_s22 = int_to_ptr.vmem [resolvable:$true] %s60_s22 }
  0x70   :  { %s2126_s18 = sld [smem:[#allocation35_spill]] }
  0x76   :  { %s1418_s23 = scalar_lea.hbm %s2126_s18, 32 }
  0x77   :  { %p1419_p12 = scmp.ne.s32.totalorder %s2126_s18, %s1418_s23  ;;  %p1422_p13 = scmp.lt.u32.totalorder %s1418_s23, %s2126_s18 }
  0x79   :  { %p1424_p0 = pnand %p1422_p13, %p1419_p12 }
  0x7b   :  { %1427 = shalt.err (!%p1424_p0)
}
  0x7c   :  { %s1428_s13 = scalar_lea.vmem %s42_s0, 32  ;;  %p1433_p2 = scmp.lt.s32.totalorder %s42_s0, %s42_s0 }
  0x7d   :  { %p1429_p1 = scmp.ne.s32.totalorder %s42_s0, %s1428_s13  ;;  %p1434_p3 = scmp.lt.s32.totalorder %s1428_s13, %s1428_s13 }
  0x7f   :  { %p1435_p4 = por %p1434_p3, %p1433_p2 }
  0x81   :  { %p1436_p5 = pnand %p1435_p4, %p1429_p1 }
  0x83   :  { %1439 = shalt.err (!%p1436_p5)
}
  0x84   :  { %44 = dma.hbm_to_vmem [thread:$0]  %s2126_s18, 32, %s42_s0, [#allocation3]  }
  0x85   :  { %s2127_s8 = sld [smem:[#allocation37_spill]] }
  0x8b   :  { %s1440_s29 = scalar_lea.hbm %s2127_s8, 64 }
  0x8c   :  { %p1441_p6 = scmp.ne.s32.totalorder %s2127_s8, %s1440_s29  ;;  %p1444_p7 = scmp.lt.u32.totalorder %s1440_s29, %s2127_s8 }
  0x8e   :  { %p1446_p8 = pnand %p1444_p7, %p1441_p6 }
  0x90   :  { %1449 = shalt.err (!%p1446_p8)
}
  0x91   :  { %s1450_s27 = scalar_lea.vmem %s61_s22, 64  ;;  %p1455_p10 = scmp.lt.s32.totalorder %s61_s22, %s61_s22 }
  0x92   :  { %p1451_p9 = scmp.ne.s32.totalorder %s61_s22, %s1450_s27  ;;  %p1456_p11 = scmp.lt.s32.totalorder %s1450_s27, %s1450_s27 }
  0x94   :  { %p1457_p12 = por %p1456_p11, %p1455_p10 }
  0x96   :  { %p1458_p13 = pnand %p1457_p12, %p1451_p9 }
  0x98   :  { %1461 = shalt.err (!%p1458_p13)
}
  0x99   :  { %s1665_s0 = smov 32   ;;  %s1666_s18 = smov 2  }
  0x9a   :  { %66 = dma.hbm_to_vmem [thread:$0]  %s2127_s8, 64, %s61_s22, [#allocation6], %s1665_s0, %s1665_s0, %s1666_s18  }
  0x9b   :  { %s1667_s13 = smov [#allocation10]   ;;  %s1668_s4 = smov [#allocation13]  }
  0x9c   :  { %s89_s1 = sshll.u32 %s1667_s13, 4  ;;  %s110_s10 = sshll.u32 %s1668_s4, 4  ;;  %s90_s1 = int_to_ptr.vmem [resolvable:$true] %s89_s1  ;;  %s111_s10 = int_to_ptr.vmem [resolvable:$true] %s110_s10 }
  0x9d   :  { %s1462_s3 = scalar_lea.hbm %s2098_s7, 16 }
  0x9e   :  { %p1463_p0 = scmp.ne.s32.totalorder %s2098_s7, %s1462_s3  ;;  %p1466_p1 = scmp.lt.u32.totalorder %s1462_s3, %s2098_s7 }
  0xa0   :  { %p1468_p2 = pnand %p1466_p1, %p1463_p0 }
  0xa2   :  { %1471 = shalt.err (!%p1468_p2)
}
  0xa3   :  { %s1472_s22 = scalar_lea.vmem %s90_s1, 16  ;;  %s1476_s8 = scalar_lea.vmem %s90_s1, 32 }
  0xa4   :  { %p1473_p3 = scmp.ne.s32.totalorder %s90_s1, %s1472_s22  ;;  %p1477_p4 = scmp.lt.s32.totalorder %s90_s1, %s90_s1 }
  0xa5   :  { %p1478_p5 = scmp.lt.s32.totalorder %s1476_s8, %s1472_s22 }
  0xa7   :  { %p1479_p6 = por %p1478_p5, %p1477_p4 }
  0xa9   :  { %p1480_p7 = pnand %p1479_p6, %p1473_p3 }
  0xab   :  { %1483 = shalt.err (!%p1480_p7)
}
  0xac   :  { %92 = dma.hbm_to_vmem [thread:$0]  %s2098_s7, 16, %s90_s1, [#allocation9]  }
  0xad   :  { %s1484_s30 = scalar_lea.hbm %s2100_s9, 512 }
  0xae   :  { %p1485_p8 = scmp.ne.s32.totalorder %s2100_s9, %s1484_s30  ;;  %p1488_p9 = scmp.lt.u32.totalorder %s1484_s30, %s2100_s9 }
  0xb0   :  { %p1490_p10 = pnand %p1488_p9, %p1485_p8 }
  0xb2   :  { %1493 = shalt.err (!%p1490_p10)
}
  0xb3   :  { %s1494_s25 = scalar_lea.vmem %s111_s10, 512  ;;  %p1499_p12 = scmp.lt.s32.totalorder %s111_s10, %s111_s10 }
  0xb4   :  { %p1495_p11 = scmp.ne.s32.totalorder %s111_s10, %s1494_s25  ;;  %p1500_p13 = scmp.lt.s32.totalorder %s1494_s25, %s1494_s25 }
  0xb6   :  { %p1501_p0 = por %p1500_p13, %p1499_p12 }
  0xb8   :  { %p1502_p1 = pnand %p1501_p0, %p1495_p11 }
  0xba   :  { %1505 = shalt.err (!%p1502_p1)
}
  0xbb   :  { %116 = dma.hbm_to_vmem [thread:$0]  %s2100_s9, 512, %s111_s10, [#allocation12], %s1659_s24, %s1659_s24, %s1660_s2  }
  0xbc   :  { %s1669_s27 = smov [#allocation16]   ;;  %s1670_s8 = smov [#allocation19]  }
  0xbd   :  { %s133_s22 = sshll.u32 %s1669_s27, 4  ;;  %s154_s28 = sshll.u32 %s1670_s8, 4  ;;  %s134_s22 = int_to_ptr.vmem [resolvable:$true] %s133_s22  ;;  %s155_s28 = int_to_ptr.vmem [resolvable:$true] %s154_s28 }
  0xbe   :  { %s1506_s4 = scalar_lea.hbm %s2102_s11, 16 }
  0xbf   :  { %p1507_p2 = scmp.ne.s32.totalorder %s2102_s11, %s1506_s4  ;;  %p1510_p3 = scmp.lt.u32.totalorder %s1506_s4, %s2102_s11 }
  0xc1   :  { %p1512_p4 = pnand %p1510_p3, %p1507_p2 }
  0xc3   :  { %1515 = shalt.err (!%p1512_p4)
}
  0xc4   :  { %s1516_s9 = scalar_lea.vmem %s134_s22, 16  ;;  %s1520_s10 = scalar_lea.vmem %s134_s22, 32 }
  0xc5   :  { %p1517_p5 = scmp.ne.s32.totalorder %s134_s22, %s1516_s9  ;;  %p1521_p6 = scmp.lt.s32.totalorder %s134_s22, %s134_s22 }
  0xc6   :  { %p1522_p7 = scmp.lt.s32.totalorder %s1520_s10, %s1516_s9 }
  0xc8   :  { %p1523_p8 = por %p1522_p7, %p1521_p6 }
  0xca   :  { %p1524_p9 = pnand %p1523_p8, %p1517_p5 }
  0xcc   :  { %1527 = shalt.err (!%p1524_p9)
}
  0xcd   :  { %136 = dma.hbm_to_vmem [thread:$0]  %s2102_s11, 16, %s134_s22, [#allocation15]  }
  0xce   :  { %s1528_s27 = scalar_lea.hbm %s2105_s14, 256 }
  0xcf   :  { %p1529_p10 = scmp.ne.s32.totalorder %s2105_s14, %s1528_s27  ;;  %p1532_p11 = scmp.lt.u32.totalorder %s1528_s27, %s2105_s14 }
  0xd1   :  { %p1534_p12 = pnand %p1532_p11, %p1529_p10 }
  0xd3   :  { %1537 = shalt.err (!%p1534_p12)
}
  0xd4   :  { %s1538_s30 = scalar_lea.vmem %s155_s28, 256  ;;  %p1543_p0 = scmp.lt.s32.totalorder %s155_s28, %s155_s28 }
  0xd5   :  { %p1539_p13 = scmp.ne.s32.totalorder %s155_s28, %s1538_s30  ;;  %p1544_p1 = scmp.lt.s32.totalorder %s1538_s30, %s1538_s30 }
  0xd7   :  { %p1545_p2 = por %p1544_p1, %p1543_p0 }
  0xd9   :  { %p1546_p3 = pnand %p1545_p2, %p1539_p13 }
  0xdb   :  { %1549 = shalt.err (!%p1546_p3)
}
  0xdc   :  { %160 = dma.hbm_to_vmem [thread:$0]  %s2105_s14, 256, %s155_s28, [#allocation18], %s1659_s24, %s1659_s24, %s1660_s2  }
  0xdd   :  { %s1671_s29 = smov [#allocation20]   ;;  %s1550_s10 = scalar_lea.hbm %s2107_s16, 256 }
  0xde   :  { %s168_s3 = sshll.u32 %s1671_s29, 4  ;;  %p1551_p4 = scmp.ne.s32.totalorder %s2107_s16, %s1550_s10  ;;  %s169_s3 = int_to_ptr.vmem [resolvable:$true] %s168_s3 }
  0xdf   :  { %p1554_p5 = scmp.lt.u32.totalorder %s1550_s10, %s2107_s16 }
  0xe1   :  { %p1556_p6 = pnand %p1554_p5, %p1551_p4 }
  0xe3   :  { %1559 = shalt.err (!%p1556_p6)
}
  0xe4   :  { %s1560_s27 = scalar_lea.vmem %s169_s3, 256  ;;  %p1565_p8 = scmp.lt.s32.totalorder %s169_s3, %s169_s3 }
  0xe5   :  { %p1561_p7 = scmp.ne.s32.totalorder %s169_s3, %s1560_s27  ;;  %p1566_p9 = scmp.lt.s32.totalorder %s1560_s27, %s1560_s27 }
  0xe7   :  { %p1567_p10 = por %p1566_p9, %p1565_p8 }
  0xe9   :  { %p1568_p11 = pnand %p1567_p10, %p1561_p7 }
  0xeb   :  { %1571 = shalt.err (!%p1568_p11)
}
  0xec   :  { %174 = dma.hbm_to_vmem [thread:$0]  %s2107_s16, 256, %s169_s3, [#allocation21], %s1659_s24, %s1659_s24, %s1660_s2  }
  0xed   :  { %1638 = dma.done.wait [#allocation3], 32  }
  0xee   :  { %1639 = vsyncadd [#allocation3], 4294967264 }
  0xef   :  { %1640 = dma.done.wait [#allocation6], 96  }
  0xf0   :  { %1641 = vsyncadd [#allocation6], 4294967200 }
  0xf1   :  { %1642 = dma.done.wait [#allocation9], 80  }
  0xf2   :  { %1643 = vsyncadd [#allocation9], 4294967216 }
  0xf3   :  { %1644 = dma.done.wait [#allocation12], 1024  }
  0xf4   :  { %1645 = vsyncadd [#allocation12], 4294966272 }
  0xf5   :  { %1646 = dma.done.wait [#allocation15], 32  }
  0xf6   :  { %1647 = vsyncadd [#allocation15], 4294967264 }
  0xf7   :  { %1648 = dma.done.wait [#allocation18], 272  }
  0xf8   :  { %1649 = vsyncadd [#allocation18], 4294967024 }
  0xf9   :  { %1650 = dma.done.wait [#allocation21], 256  }
  0xfa   :  { %1651 = vsyncadd [#allocation21], 4294967040  ;;  %v1672_v0 = vmov 0.0   ;;  %vm1673_vm0 = vmmov 0   ;;  %v1674_v1 = vmov 0.0|0.0   ;;  %vm298_vm1 = vcmask 1043456  }
  0xfb   :  { %1152 = vmatprep.subr.mxu1 %v1672_v0  ;;  %1154 = vmatprep.mubr.msk.f32.mxu1 %vm1673_vm0, %v1672_v0  ;;  %vm294_vm2 = vcmask 31744   ;;  %v214_v2 = vld [vmem:[#allocation8] sm:$0xf]  ;;  %v213_v3 = vld [vmem:[#allocation2] sm:$0x3]  ;;  %s2128_s2 = sld [smem:[#allocation39_spill]] }
  0xfc   :  { %1226 = vmatprep.subr.bf16.mxu0 %v1674_v1  ;;  %1149 = vmatprep.mubr.msk.f32.mxu0 %vm1673_vm0, %v1672_v0  ;;  %v381_v6 = vld [vmem:[%s2096_s5] sm:$0xff]  ;;  %v382_v7 = vld [vmem:[%s2096_s5 + $0x8] sm:$0xff]  ;;  %v383_v12 = vld [vmem:[%s2096_s5 + $0x10] sm:$0xff]  ;;  %vm220_vm3 = vcmask 261120   ;;  %vm498_vm4 = vcmask 254976   ;;  %vm787_vm5 = vcmask 123904  }
  0xfd   :  { %1153 = vmatpush3.msk.msra.mxu1 %vm298_vm1, %v214_v2  ;;  %v1233_v9 = vpack.c.bf16 %v382_v7, %v381_v6  ;;  %v384_v13 = vld [vmem:[%s2096_s5 + $0x18] sm:$0xff]  ;;  %v215_v16 = vld [vmem:[#allocation5] sm:$0x3]  ;;  %v380_v17 = vld [vmem:[#allocation7] sm:$0x3]  ;;  %s1675_s5 = smov 64  }
  0xfe   :  { %1155 = vmatmul.mubr.msk.f32.vlgmr.msra.gmra.mrb[0].mxu1 %vm294_vm2, %v213_v3  ;;  %1232 = vmatprep.subr.bf16.mxu1 %v1674_v1  ;;  %v1236_v15 = vpack.c.bf16 %v384_v13, %v383_v12  ;;  %v1089_v20 = vld [vmem:[#allocation10] ss:$0 sm:$0xff]  ;;  %v1088_v27 = vld [vmem:[%s2097_s6] ss:$0 sm:$0xff]  ;;  %v585_v38 = vld [vmem:[#allocation13] sm:$0xff]  ;;  %s1676_s6 = smov 96  }
  0xff   :  { %1165 = vmatprep.mubr.msk.f32.mxu1 %vm1673_vm0, %v1672_v0  ;;  %1234 = vmatpush3.bf16.msra.mxu1 %v1233_v9  ;;  %v586_v39 = vld [vmem:[#allocation13 + $0x8] sm:$0xff]  ;;  %v587_v40 = vld [vmem:[#allocation13 + $0x10] sm:$0xff]  ;;  %v588_v42 = vld [vmem:[#allocation13 + $0x18] sm:$0xff]  ;;  %vm802_vm6 = vcmask 130048  }
 0x100   :  { %1235 = vmatprep.subr.bf16.mxu1 %v1674_v1  ;;  %v1245_v41 = vpack.c.bf16 %v586_v39, %v585_v38  ;;  %v500_v43 = vld [vmem:[#allocation11] sm:$0xff]  ;;  %v501_v44 = vld [vmem:[#allocation11 + $0x8] sm:$0xff]  ;;  %v502_v45 = vld [vmem:[#allocation11 + $0x10] sm:$0xff]  ;;  %v1248_v47 = vpack.c.bf16 %v588_v42, %v587_v40 }
 0x101   :  { %v216_v4 = vld [vmem:[%s2128_s2] sm:$0xff]  ;;  %v217_v5 = vld [vmem:[%s2128_s2 + $0x8] sm:$0xff]  ;;  %v218_v10 = vld [vmem:[%s2128_s2 + $0x10] sm:$0xff]  ;;  %v1239_v48 = vpack.c.bf16 %v501_v44, %v500_v43 }
 0x102   :  { %v1227_v8 = vpack.c.bf16 %v217_v5, %v216_v4  ;;  %v219_v11 = vld [vmem:[%s2128_s2 + $0x18] sm:$0xff]  ;;  %v503_v46 = vld [vmem:[#allocation11 + $0x18] sm:$0xff]  ;;  %v1094_v58 = vld [vmem:[#allocation16] ss:$0 sm:$0xff] }
 0x103   :  { %v1230_v14 = vpack.c.bf16 %v219_v11, %v218_v10  ;;  %1237 = vmatpush3.bf16.msra.mxu1 %v1236_v15  ;;  %v1242_v50 = vpack.c.bf16 %v503_v46, %v502_v45  ;;  %v584_v51 = vld [vmem:[#allocation7 + $0x2] sm:$0x3]  ;;  %v1092_v63 = vld [vmem:[#allocation14] ss:$0 sm:$0xff]  ;;  %v800_v46 = vld [vmem:[#allocation19] sm:$0xff] }
 0x104   :  { %1228 = vmatpush3.bf16.msra.mxu0 %v1227_v8  ;;  %1244 = vmatprep.subr.bf16.mxu1 %v1674_v1  ;;  %v705_v15 = vld [vmem:[%s2103_s12 + $0x8] sm:$0xff] }
 0x105   :  { %1229 = vmatprep.subr.bf16.mxu0 %v1674_v1 }
 0x106   :  { %1166 = vmatmul.mubr.msk.f32.vlgmr.msra.gmra.mrb[2].mxu1 %vm220_vm3, %v380_v17 }
 0x107   :  { %1187 = vmatprep.mubr.msk.f32.mxu1 %vm1673_vm0, %v1672_v0  ;;  %1246 = vmatpush3.bf16.msra.mxu1 %v1245_v41 }
 0x108   :  { %1231 = vmatpush3.bf16.msra.mxu0 %v1230_v14  ;;  %1247 = vmatprep.subr.bf16.mxu1 %v1674_v1  ;;  %v704_v14 = vld [vmem:[%s2103_s12] sm:$0xff] }
 0x109   :  { %1238 = vmatprep.subr.bf16.mxu0 %v1674_v1 }
 0x10b   :  { %1150 = vmatmul.mubr.msk.f32.vlgmr.msra.gmra.mrb[0].mxu0 %vm220_vm3, %v215_v16  ;;  %1249 = vmatpush3.bf16.msra.mxu1 %v1248_v47  ;;  %v706_v16 = vld [vmem:[%s2103_s12 + $0x10] sm:$0xff]  ;;  %v801_v47 = vld [vmem:[#allocation19 + $0x8] sm:$0xff] }
 0x10c   :  { %1176 = vmatprep.mubr.msk.f32.mxu0 %vm1673_vm0, %v1672_v0  ;;  %1240 = vmatpush3.bf16.msra.mxu0 %v1239_v48  ;;  %v1257_v48 = vpack.c.bf16 %v801_v47, %v800_v46 }
 0x10d   :  { %1241 = vmatprep.subr.bf16.mxu0 %v1674_v1  ;;  %1256 = vmatprep.subr.bf16.mxu1 %v1674_v1 }
 0x10e   :  { %1188 = vmatmul.mubr.msk.f32.vlgmr.msra.gmra.mrb[4].mxu1 %vm220_vm3, %v584_v51 }
 0x10f   :  { %1205 = vmatprep.mubr.msk.f32.mxu1 %vm1673_vm0, %v1672_v0  ;;  %1258 = vmatpush3.bf16.msra.mxu1 %v1257_v48 }
 0x110   :  { %1243 = vmatpush3.bf16.msra.mxu0 %v1242_v50  ;;  %1259 = vmatprep.subr.bf16.mxu1 %v1674_v1  ;;  %v880_v50 = vld [vmem:[#allocation20] sm:$0xff] }
 0x111   :  { %1250 = vmatprep.subr.bf16.mxu0 %v1674_v1 }
 0x1d1   :  { %v368_v18 = vpop.f32.mrb[0].mxu1 }
 0x1d2   :  { %v1156_v19 = vpop.f32.mrb[1].mxu1 }
 0x1d9   :  { %v461_v22 = vpop.f32.mrb[2].mxu1 }
 0x1da   :  { %v462_v24 = vadd.f32 %v1089_v20, %v461_v22  ;;  %v1167_v25 = vpop.f32.mrb[3].mxu1 }
 0x1dc   :  { %473 = vrot.lane.b32.xlu0 %v462_v24, %s1675_s5 }
 0x1de   :  { %v290_v21 = vpop.f32.mrb[0].mxu0 }
 0x1df   :  { %v369_v23 = vadd.f32 %v368_v18, %v290_v21  ;;  %v1151_v26 = vpop.f32.mrb[1].mxu0  ;;  %v707_v18 = vld [vmem:[%s2103_s12 + $0x18] sm:$0xff] }
 0x1e0   :  { %v1254_v19 = vpack.c.bf16 %v707_v18, %v706_v16 }
 0x1e1   :  { %v379_v28 = vadd.f32 %v1088_v27, %v369_v23  ;;  %v665_v59 = vpop.f32.mrb[4].mxu1  ;;  %v876_v27 = vld [vmem:[%s2106_s15] sm:$0xff] }
 0x1e2   :  { %v666_v60 = vadd.f32 %v1094_v58, %v665_v59  ;;  %v1189_v61 = vpop.f32.mrb[5].mxu1 }
 0x1e3   :  { %v465_v29 = vadd.f32 %v462_v24, %v379_v28 }
 0x1e5   :  { %v1091_v30 = vmul.f32 -1.442695, %v465_v29 }
 0x1e7   :  { %1292 = vpow2.f32 %v1091_v30  ;;  %v878_v30 = vld [vmem:[%s2106_s15 + $0x10] sm:$0xff] }
 0x1f1   :  { %v1293_v31 = vpop.eup %1292 }
 0x1f2   :  { %v469_v32 = vadd.f32 1.0, %v1293_v31  ;;  %v879_v31 = vld [vmem:[%s2106_s15 + $0x18] sm:$0xff] }
 0x1f4   :  { %1294 = vrcp.f32 %v469_v32 }
 0x1fe   :  { %v1295_v33 = vpop.eup %1294 }
 0x1ff   :  { %v483_v53 = vsub.f32 1.0, %v1295_v33 }
 0x24e   :  { %v474_v34 = vpop.permute.xlu0 %473 }
 0x24f   :  { %v476_v35 = vmul.f32 %v1295_v33, %v474_v34  ;;  %v1097_v34 = vld [vmem:[#allocation17] ss:$0 sm:$0xff] }
 0x251   :  { %478 = vrot.lane.b32.xlu0 %v476_v35, %s1675_s5 }
 0x2c3   :  { %v479_v36 = vpop.permute.xlu0 %478 }
 0x2c4   :  { %v481_v37 = vadd.f32 %v479_v36, %v379_v28  ;;  %v877_v28 = vld [vmem:[%s2106_s15 + $0x8] sm:$0xff]  ;;  %s1677_s15 = smov [#allocation23]  }
 0x2c5   :  { %v1263_v29 = vpack.c.bf16 %v877_v28, %v876_v27  ;;  %s1050_s21 = sshll.u32 %s1677_s15, 4  ;;  %s1051_s21 = int_to_ptr.vmem [resolvable:$true] %s1050_s21 }
 0x2c6   :  { %1296 = vtanh.f32 %v481_v37  ;;  %s1572_s9 = scalar_lea.vmem %s1051_s21, 64  ;;  %p1577_p13 = scmp.lt.s32.totalorder %s1051_s21, %s1051_s21 }
 0x2c7   :  { %p1573_p12 = scmp.ne.s32.totalorder %s1051_s21, %s1572_s9  ;;  %p1578_p0 = scmp.lt.s32.totalorder %s1572_s9, %s1572_s9 }
 0x2c9   :  { %p1579_p1 = por %p1578_p0, %p1577_p13 }
 0x2cb   :  { %p1580_p2 = pnand %p1579_p1, %p1573_p12 }
 0x2d0   :  { %v1297_v49 = vpop.eup %1296 }
 0x2d1   :  { %485 = vrot.lane.b32.xlu1 %v1297_v49, %s1676_s6 }
 0x2d5   :  { %489 = vrot.lane.b32.xlu1 %v380_v17, %s1665_s0  ;;  %v1251_v17 = vpack.c.bf16 %v705_v15, %v704_v14 }
 0x2d9   :  { %677 = vrot.lane.b32.xlu1 %v666_v60, %s1675_s5 }
 0x343   :  { %v486_v52 = vpop.permute.xlu1 %485 }
 0x344   :  { %v488_v55 = vmul.f32 %v486_v52, %v483_v53 }
 0x347   :  { %v490_v54 = vpop.permute.xlu1 %489 }
 0x348   :  { %v492_v56 = vmul.f32 %v1295_v33, %v490_v54  ;;  %v1266_v33 = vpack.c.bf16 %v879_v31, %v878_v30 }
 0x34a   :  { %v493_v57 = vadd.f32 %v492_v56, %v488_v55 }
 0x34b   :  { %v678_v9 = vpop.permute.xlu1 %677 }
 0x34c   :  { %495 = vrot.lane.b32.xlu0 %v493_v57, %s1676_s6 }
 0x3be   :  { %v496_v62 = vpop.permute.xlu0 %495 }
 0x3bf   :  { %499 = vst.msk [vmem:[#allocation23] sm:$0x3] %vm498_vm4, %v496_v62  ;;  %1177 = vmatmul.mubr.msk.f32.vlgmr.msra.gmra.mrb[2].mxu0 %vm220_vm3, %v496_v62 }
 0x3c0   :  { %1198 = vmatprep.mubr.msk.f32.mxu0 %vm1673_vm0, %v1672_v0  ;;  %1252 = vmatpush3.bf16.msra.mxu0 %v1251_v17 }
 0x3c1   :  { %1253 = vmatprep.subr.bf16.mxu0 %v1674_v1 }
 0x3c4   :  { %1255 = vmatpush3.bf16.msra.mxu0 %v1254_v19 }
 0x3c5   :  { %1262 = vmatprep.subr.bf16.mxu0 %v1674_v1 }
 0x492   :  { %v579_v2 = vpop.f32.mrb[2].mxu0 }
 0x493   :  { %v580_v3 = vadd.f32 %v1092_v63, %v579_v2  ;;  %v1178_v4 = vpop.f32.mrb[3].mxu0 }
 0x495   :  { %v669_v5 = vadd.f32 %v666_v60, %v580_v3 }
 0x497   :  { %v1096_v6 = vmul.f32 -1.442695, %v669_v5 }
 0x499   :  { %1298 = vpow2.f32 %v1096_v6 }
 0x4a3   :  { %v1299_v7 = vpop.eup %1298 }
 0x4a4   :  { %v673_v8 = vadd.f32 1.0, %v1299_v7 }
 0x4a6   :  { %1300 = vrcp.f32 %v673_v8 }
 0x4b0   :  { %v1301_v10 = vpop.eup %1300 }
 0x4b1   :  { %v680_v11 = vmul.f32 %v1301_v10, %v678_v9  ;;  %v687_v22 = vsub.f32 1.0, %v1301_v10 }
 0x4b3   :  { %682 = vrot.lane.b32.xlu0 %v680_v11, %s1675_s5 }
 0x4b7   :  { %693 = vrot.lane.b32.xlu0 %v584_v51, %s1665_s0  ;;  %v881_v51 = vld [vmem:[#allocation20 + $0x8] sm:$0xff] }
 0x4b8   :  { %v1260_v53 = vpack.c.bf16 %v881_v51, %v880_v50 }
 0x525   :  { %v683_v12 = vpop.permute.xlu0 %682 }
 0x526   :  { %v685_v13 = vadd.f32 %v683_v12, %v580_v3 }
 0x528   :  { %1302 = vtanh.f32 %v685_v13 }
 0x529   :  { %v694_v21 = vpop.permute.xlu0 %693 }
 0x52a   :  { %v696_v24 = vmul.f32 %v1301_v10, %v694_v21 }
 0x532   :  { %v1303_v20 = vpop.eup %1302 }
 0x533   :  { %689 = vrot.lane.b32.xlu1 %v1303_v20, %s1676_s6 }
 0x5a5   :  { %v690_v23 = vpop.permute.xlu1 %689 }
 0x5a6   :  { %v692_v25 = vmul.f32 %v690_v23, %v687_v22 }
 0x5a8   :  { %v697_v26 = vadd.f32 %v696_v24, %v692_v25 }
 0x5aa   :  { %699 = vrot.lane.b32.xlu1 %v697_v26, %s1676_s6 }
 0x61c   :  { %v700_v32 = vpop.permute.xlu1 %699 }
 0x61d   :  { %703 = vst.msk [vmem:[#allocation23 + $0x2] sm:$0x3] %vm498_vm4, %v700_v32  ;;  %1199 = vmatmul.mubr.msk.f32.vlgmr.msra.gmra.mrb[4].mxu0 %vm220_vm3, %v700_v32 }
 0x61e   :  { %1264 = vmatpush3.bf16.msra.mxu0 %v1263_v29  ;;  %1223 = vmatprep.mubr.msk.f32.mxu0 %vm1673_vm0, %v1672_v0 }
 0x61f   :  { %1265 = vmatprep.subr.bf16.mxu0 %v1674_v1 }
 0x622   :  { %1267 = vmatpush3.bf16.msra.mxu0 %v1266_v33 }
 0x625   :  { %1224 = vmatmul.mubr.msk.f32.vlgmr.msra.gmra.mrb[6].mxu0 %vm220_vm3, %v700_v32 }
 0x6f0   :  { %v783_v35 = vpop.f32.mrb[4].mxu0 }
 0x6f1   :  { %v784_v36 = vadd.f32 %v1097_v34, %v783_v35  ;;  %v1200_v37 = vpop.f32.mrb[5].mxu0 }
 0x6f3   :  { %v789_v38 = vsel %vm787_vm5, %v784_v36, -inf  ;;  %788 = vst.msk [vmem:[#allocation25] sm:$0x3] %vm787_vm5, %v784_v36 }
 0x6f4   :  { %790 = vmax.xlane.f32.xlu0 %v789_v38 }
 0x6f8   :  { %v2043_v39 = vpop.f32.mrb[6].mxu0 }
 0x6f9   :  { %v1225_v40 = vpop.f32.mrb[7].mxu0 }
 0x781   :  { %v791_v41 = vpop.xlane.xlu0 %790 }
 0x782   :  { %v792_v42 = vsub.f32 %v784_v36, %v791_v41 }
 0x784   :  { %v793_v43 = vmul.f32 1.442695, %v792_v42 }
 0x786   :  { %1304 = vpow2.f32 %v793_v43 }
 0x790   :  { %v1305_v44 = vpop.eup %1304 }
 0x791   :  { %v795_v45 = vsel %vm787_vm5, %v1305_v44, 0.0 }
 0x792   :  { %796 = vadd.xlane.f32.xlu1 %v795_v45 }
 0x81f   :  { %v797_v49 = vpop.xlane.xlu1 %796 }
 0x820   :  { %1306 = vrcp.f32 %v797_v49 }
 0x82a   :  { %v1307_v52 = vpop.eup %1306 }
 0x82b   :  { %v799_v54 = vmul.f32 %v1307_v52, %v1305_v44 }
 0x82d   :  { %1206 = vmatmul.mubr.msk.f32.vlgmr.msra.gmra.mrb[6].mxu1 %vm802_vm6, %v799_v54 }
 0x82e   :  { %1261 = vmatpush3.bf16.msra.mxu1 %v1260_v53  ;;  %1212 = vmatprep.mubr.msk.f32.mxu1 %vm1673_vm0, %v1672_v0 }
 0x900   :  { %v872_v55 = vpop.f32.mrb[6].mxu1 }
 0x901   :  { %v1207_v56 = vpop.f32.mrb[7].mxu1  ;;  %1213 = vmatmul.mubr.msk.f32.vlgmr.msra.gmra.mrb[8].mxu1 %vm802_vm6, %v872_v55 }
 0x902   :  { %1583 = shalt.err (!%p1580_p2)
}
 0x903   :  { %s1584_s25 = scalar_lea.hbm %s2110_s19, 64 }
 0x904   :  { %p1585_p3 = scmp.ne.s32.totalorder %s2110_s19, %s1584_s25  ;;  %p1588_p4 = scmp.lt.u32.totalorder %s1584_s25, %s2110_s19 }
 0x906   :  { %p1590_p5 = pnand %p1588_p4, %p1585_p3 }
 0x908   :  { %1593 = shalt.err (!%p1590_p5)
}
 0x909   :  { %1056 = dma.vmem_to_hbm [thread:$0]  %s1051_s21, 64, %s2110_s19, [#allocation24], %s1665_s0, %s1665_s0, %s1666_s18  }
 0x90a   :  { %s1678_s28 = smov [#allocation25]  }
 0x90b   :  { %s1063_s16 = sshll.u32 %s1678_s28, 4  ;;  %s1064_s16 = int_to_ptr.vmem [resolvable:$true] %s1063_s16 }
 0x90c   :  { %s1594_s24 = scalar_lea.vmem %s1064_s16, 32  ;;  %p1599_p7 = scmp.lt.s32.totalorder %s1064_s16, %s1064_s16 }
 0x90d   :  { %p1595_p6 = scmp.ne.s32.totalorder %s1064_s16, %s1594_s24  ;;  %p1600_p8 = scmp.lt.s32.totalorder %s1594_s24, %s1594_s24 }
 0x90f   :  { %p1601_p9 = por %p1600_p8, %p1599_p7 }
 0x911   :  { %p1602_p10 = pnand %p1601_p9, %p1595_p6 }
 0x913   :  { %1605 = shalt.err (!%p1602_p10)
}
 0x914   :  { %s1606_s26 = scalar_lea.hbm %s2111_s20, 32 }
 0x915   :  { %p1607_p11 = scmp.ne.s32.totalorder %s2111_s20, %s1606_s26  ;;  %p1610_p12 = scmp.lt.u32.totalorder %s1606_s26, %s2111_s20 }
 0x917   :  { %p1612_p13 = pnand %p1610_p12, %p1607_p11 }
 0x919   :  { %1615 = shalt.err (!%p1612_p13)
}
 0x91a   :  { %1066 = dma.vmem_to_hbm [thread:$0]  %s1064_s16, 32, %s2111_s20, [#allocation24]   ;;  %v1102_v1 = vld [vmem:[%s2108_s17] ss:$0 sm:$0xff]  ;;  %vm1033_vm7 = vcmask 517120  }
 0x91b   :  { %s1679_s22 = smov [#allocation22]  }
 0x91c   :  { %s1041_s29 = sshll.u32 %s1679_s22, 4  ;;  %s1042_s29 = int_to_ptr.vmem [resolvable:$true] %s1041_s29 }
 0x91d   :  { %s1616_s3 = scalar_lea.vmem %s1042_s29, 32  ;;  %p1621_p1 = scmp.lt.s32.totalorder %s1042_s29, %s1042_s29 }
 0x91e   :  { %p1617_p0 = scmp.ne.s32.totalorder %s1042_s29, %s1616_s3  ;;  %p1622_p2 = scmp.lt.s32.totalorder %s1616_s3, %s1616_s3 }
 0x920   :  { %p1623_p3 = por %p1622_p2, %p1621_p1 }
 0x922   :  { %p1624_p4 = pnand %p1623_p3, %p1617_p0 }
 0x9d4   :  { %v951_v0 = vpop.f32.mrb[8].mxu1 }
 0x9d5   :  { %v1022_v57 = vadd.f32 %v2043_v39, %v951_v0  ;;  %v1214_v58 = vpop.f32.mrb[9].mxu1 }
 0x9d7   :  { %v1032_v59 = vadd.f32 %v1102_v1, %v1022_v57 }
 0x9d9   :  { %1034 = vst.msk [vmem:[#allocation22] sm:$0x3] %vm1033_vm7, %v1032_v59 }
 0x9da   :  { %1627 = shalt.err (!%p1624_p4)
}
 0x9db   :  { %s2129_s21 = sld [smem:[#allocation40_spill]] }
 0x9e1   :  { %s1628_s17 = scalar_lea.hbm %s2129_s21, 32 }
 0x9e2   :  { %p1629_p5 = scmp.ne.s32.totalorder %s2129_s21, %s1628_s17  ;;  %p1632_p6 = scmp.lt.u32.totalorder %s1628_s17, %s2129_s21 }
 0x9e4   :  { %p1634_p7 = pnand %p1632_p6, %p1629_p5 }
 0x9e6   :  { %1637 = shalt.err (!%p1634_p7)
}
 0x9e7   :  { %1044 = dma.vmem_to_hbm [thread:$0]  %s1042_s29, 32, %s2129_s21, [#allocation4]  }
 0x9e8   :  { %1652 = dma.done.wait [#allocation4], 32  }
 0x9e9   :  { %1653 = vsyncadd [#allocation4], 4294967264 }
 0x9ea   :  { %1654 = dma.done.wait [#allocation24], 96  }
 0x9eb   :  { %1655 = vsyncadd [#allocation24], 4294967200 }
 0x9ec   :  { %1076 = vsyncpa [#allocation3], 1 }
 0x9ed   :  { %1077 = vsyncpa [#allocation6], 1 }
 0x9ee   :  { %1078 = vsyncpa [#allocation9], 1 }
 0x9ef   :  { %1079 = vsyncpa [#allocation12], 1 }
 0x9f0   :  { %1080 = vsyncpa [#allocation15], 1 }
 0x9f1   :  { %1081 = vsyncpa [#allocation18], 1 }
 0x9f2   :  { %1082 = vsyncpa [#allocation21], 1 }
 0x9f3   :  { %1083 = vsyncpa [#allocation4], 1 }
 0x9f4   :  { %1084 = vsyncpa [#allocation24], 1 }

</bundles_post_ra>
